<compile_context>
chip_gen: v7x
topology: tpu7x:2x2x1
jax: 0.10.0
libtpu: 0.0.40
codegen_flags: <defaults>
</compile_context>

<pallas_src>
import jax
import jax.numpy as jnp
from jax.experimental import pallas as pl
from jax.experimental.pallas import tpu as pltpu


def _sbp_mul_kernel(mult_ref, x_ref, o_ref):
    # mult_ref: (1, td) per-feature multiplier; x_ref/o_ref: (tb, td) tiles.
    o_ref[...] = x_ref[...] * mult_ref[...]


def _round_up(v, m):
    return ((v + m - 1) // m) * m


def _pick_tiles(B, D):
    # Lane (feature) axis: multiple of 128, or full extent if D isn't 128-divisible.
    tile_d = min(D, 2048) if D % 128 == 0 else D
    # Sublane (batch) axis: multiple of 8 (or full B if B < 8).  Cap the f32
    # tile at ~2 MiB so (x + out) double buffers + the tiny multiplier row fit
    # comfortably in the smallest scoped-VMEM defaults across v5e/v6e/v7x.
    max_elems = 512 * 1024  # 2 MiB of f32 per buffer
    if B <= 8:
        tile_b = B
    else:
        cap = max(8, (max_elems // tile_d) // 8 * 8)
        tile_b = min(_round_up(B, 8), 512, cap)
    return tile_b, tile_d


def sbp_forward(x, mu, log_sigma2, *, tile_b=None, tile_d=None):
    """Eval-mode SBP forward.  x: (B, D), mu/log_sigma2: (D,) -> (B, D)."""
    B, D = x.shape

    # Grid-invariant per-feature math, computed once (hoisted out of the kernel).
    log_alpha = log_sigma2 - 2.0 * jnp.log(jnp.abs(mu) + 1e-8)
    log_alpha = jnp.clip(log_alpha, -10.0, 10.0)
    mask = (log_alpha < 0.0).astype(x.dtype)
    mult = (mu.astype(x.dtype) * mask).reshape(1, D)

    auto_b, auto_d = _pick_tiles(B, D)
    tb = auto_b if tile_b is None else tile_b
    td = auto_d if tile_d is None else tile_d

    grid = (pl.cdiv(B, tb), pl.cdiv(D, td))
    return pl.pallas_call(
        _sbp_mul_kernel,
        out_shape=jax.ShapeDtypeStruct((B, D), x.dtype),
        grid_spec=pltpu.PrefetchScalarGridSpec(
            num_scalar_prefetch=0,
            grid=grid,
            in_specs=[
                pl.BlockSpec((1, td), lambda i, j: (0, j)),    # multiplicator row
                pl.BlockSpec((tb, td), lambda i, j: (i, j)),   # x tile
            ],
            out_specs=pl.BlockSpec((tb, td), lambda i, j: (i, j)),
        ),
        compiler_params=pltpu.CompilerParams(
            dimension_semantics=("parallel", "parallel")),
    )(mult, x)


def sbp_reference(x, mu, log_sigma2):
    log_alpha = log_sigma2 - 2.0 * jnp.log(jnp.abs(mu) + 1e-8)
    log_alpha = jnp.clip(log_alpha, -10.0, 10.0)
    mask = (log_alpha < 0.0).astype(x.dtype)
    return (mu * mask)[None, :] * x


if __name__ == "__main__":
    key = jax.random.PRNGKey(0)
    B, D = 16, 256
    init_logsigma2 = 9.0

    k_x, k_mu = jax.random.split(key)
    x = jax.random.normal(k_x, (B, D), dtype=jnp.float32)
    # mu ~ N(1.0, 0.01), log_sigma2 filled with -init_logsigma2 (as in __init__)
    mu = 1.0 + 0.01 * jax.random.normal(k_mu, (D,), dtype=jnp.float32)
    log_sigma2 = jnp.full((D,), -init_logsigma2, dtype=jnp.float32)
    # Flip some features to a large log_sigma2 so the mask path (mask == 0)
    # is actually exercised.
    log_sigma2 = log_sigma2.at[::4].set(init_logsigma2)

    ref = sbp_reference(x, mu, log_sigma2)

    # 1) Auto-picked tiles (single block here since shapes are small).
    out = jax.block_until_ready(sbp_forward(x, mu, log_sigma2))
    assert out.shape == (B, D)
    assert jnp.allclose(out, ref, atol=1e-6, rtol=1e-6)

    # 2) Force a multi-block 2D grid (2 x 2) to exercise the tiled path.
    out2 = jax.block_until_ready(sbp_forward(x, mu, log_sigma2, tile_b=8, tile_d=128))
    assert jnp.allclose(out2, ref, atol=1e-6, rtol=1e-6)

    print("KERNEL_OK")
</pallas_src>

<mosaic_0001>
module attributes {stable_mosaic.version = 11 : i64} {
  func.func @_sbp_mul_kernel(%arg0: i32, %arg1: i32, %arg2: memref<1x256xf32, #tpu.memory_space<vmem>>, %arg3: memref<16x256xf32, #tpu.memory_space<vmem>>, %arg4: memref<16x256xf32, #tpu.memory_space<vmem>>) attributes {dimension_semantics = [#tpu.dimension_semantics<parallel>, #tpu.dimension_semantics<parallel>], iteration_bounds = array<i64: 1, 1>, scalar_prefetch = 0 : i64, scratch_operands = 0 : i64, tpu.core_type = #tpu.core_type<tc>, window_params = [{transform_indices = @transform_0, window_bounds = array<i64: 1, 256>}, {transform_indices = @transform_1, window_bounds = array<i64: 16, 256>}, {transform_indices = @transform_2, window_bounds = array<i64: 16, 256>}]} {
    %c0 = arith.constant 0 : index
    %c0_0 = arith.constant 0 : index
    %0 = vector.load %arg3[%c0, %c0_0] : memref<16x256xf32, #tpu.memory_space<vmem>>, vector<16x256xf32>
    %c0_1 = arith.constant 0 : index
    %c0_2 = arith.constant 0 : index
    %1 = vector.load %arg2[%c0_1, %c0_2] : memref<1x256xf32, #tpu.memory_space<vmem>>, vector<1x256xf32>
    %2 = vector.broadcast %1 : vector<1x256xf32> to vector<16x256xf32>
    %3 = arith.mulf %0, %2 : vector<16x256xf32>
    %c0_3 = arith.constant 0 : index
    %c0_4 = arith.constant 0 : index
    %4 = vector.load %arg4[%c0_3, %c0_4] : memref<16x256xf32, #tpu.memory_space<vmem>>, vector<16x256xf32>
    tpu.vector_store %arg4[%c0_3, %c0_4], %3 {strides = array<i32>} : memref<16x256xf32, #tpu.memory_space<vmem>>, vector<16x256xf32>,
    return
  }
  func.func @transform_0(%arg0: i32, %arg1: i32) -> (i32, i32) {
    %c0_i32 = arith.constant 0 : i32
    %c0_i32_0 = arith.constant 0 : i32
    return %c0_i32, %arg1 : i32, i32
  }
  func.func @transform_1(%arg0: i32, %arg1: i32) -> (i32, i32) {
    %c0_i32 = arith.constant 0 : i32
    return %arg0, %arg1 : i32, i32
  }
  func.func @transform_2(%arg0: i32, %arg1: i32) -> (i32, i32) {
    %c0_i32 = arith.constant 0 : i32
    return %arg0, %arg1 : i32, i32
  }
}

</mosaic_0001>

<bundles_post_ra>
// kernel: tpu_custom_call.1
= control target key start
LH: loop header
LB: loop body
LE: loop exit
PB: predicated region body
PF: predicated region fallthrough
CT: control target
= control target key end

     0   :  { %7 = vsyncpa [#allocation3], 0  ;;  %s226_s0 = inlined_call_operand.hbm [shape: f32[1,256], index: 0, kind: input, shape index: {}]   ;;  %s227_s1 = inlined_call_operand.hbm [shape: f32[16,256], index: 1, kind: input, shape index: {}]   ;;  %s228_s2 = inlined_call_operand.hbm [shape: f32[16,256], index: 2, kind: output, shape index: {}]  }
   0x1   :  { %8 = vsyncpa [#allocation6], 0 }
   0x2   :  { %9 = vsyncpa [#allocation4], 0  ;;  %s157_s9 = smov [#allocation2]   ;;  %s158_s11 = smov [#allocation5]  }
   0x3   :  { %s16_s10 = sshll.u32 %s157_s9, 4  ;;  %s25_s12 = sshll.u32 %s158_s11, 4  ;;  %s17_s10 = int_to_ptr.vmem [resolvable:$true] %s16_s10  ;;  %s177_s12 = int_to_ptr.vmem [resolvable:$true] %s25_s12 }
   0x4   :  { %s85_s15 = scalar_lea.hbm %s226_s0, 32 }
   0x5   :  { %p86_p0 = scmp.ne.s32.totalorder %s226_s0, %s85_s15  ;;  %p89_p1 = scmp.lt.u32.totalorder %s85_s15, %s226_s0 }
   0x7   :  { %p91_p2 = pnand %p89_p1, %p86_p0 }
   0x9   :  { %94 = shalt.err (!%p91_p2)
}
   0xa   :  { %s95_s20 = scalar_lea.vmem %s17_s10, 32  ;;  %p100_p4 = scmp.lt.s32.totalorder %s17_s10, %s17_s10 }
   0xb   :  { %p96_p3 = scmp.ne.s32.totalorder %s17_s10, %s95_s20  ;;  %p101_p5 = scmp.lt.s32.totalorder %s95_s20, %s95_s20 }
   0xd   :  { %p102_p6 = por %p101_p5, %p100_p4 }
   0xf   :  { %p103_p7 = pnand %p102_p6, %p96_p3 }
  0x11   :  { %106 = shalt.err (!%p103_p7)
}
  0x12   :  { %19 = dma.hbm_to_vmem [thread:$0]  %s226_s0, 32, %s17_s10, [#allocation3]  }
  0x13   :  { %s107_s25 = scalar_lea.hbm %s227_s1, 512 }
  0x14   :  { %p108_p8 = scmp.ne.s32.totalorder %s227_s1, %s107_s25  ;;  %p111_p9 = scmp.lt.u32.totalorder %s107_s25, %s227_s1 }
  0x16   :  { %p113_p10 = pnand %p111_p9, %p108_p8 }
  0x18   :  { %116 = shalt.err (!%p113_p10)
}
  0x19   :  { %s117_s30 = scalar_lea.vmem %s177_s12, 512  ;;  %p122_p12 = scmp.lt.s32.totalorder %s177_s12, %s177_s12 }
  0x1a   :  { %p118_p11 = scmp.ne.s32.totalorder %s177_s12, %s117_s30  ;;  %p123_p13 = scmp.lt.s32.totalorder %s117_s30, %s117_s30 }
  0x1c   :  { %p124_p0 = por %p123_p13, %p122_p12 }
  0x1e   :  { %p125_p1 = pnand %p124_p0, %p118_p11 }
  0x20   :  { %128 = shalt.err (!%p125_p1)
}
  0x21   :  { %s159_s0 = smov 256   ;;  %s160_s3 = smov 16  }
  0x22   :  { %31 = dma.hbm_to_vmem [thread:$0]  %s227_s1, 512, %s177_s12, [#allocation6], %s159_s0, %s159_s0, %s160_s3  }
  0x23   :  { %151 = dma.done.wait [#allocation3], 32  }
  0x24   :  { %152 = vsyncadd [#allocation3], 4294967264 }
  0x25   :  { %153 = dma.done.wait [#allocation6], 512  }
  0x26   :  { %154 = vsyncadd [#allocation6], 4294966784  ;;  %v44_v0 = vlaneseq  ;;  %v38_v4 = vld [vmem:[#allocation5] sm:$0xff]  ;;  %v42_v5 = vld [vmem:[#allocation2] sm:$0x3]  ;;  %s161_s6 = smov [#allocation7]  }
  0x27   :  { %v39_v6 = vld [vmem:[#allocation5 + $0x8] sm:$0xff]  ;;  %s67_s7 = sshll.u32 %s161_s6, 4  ;;  %v40_v9 = vld [vmem:[#allocation5 + $0x10] sm:$0xff]  ;;  %v41_v10 = vld [vmem:[#allocation5 + $0x18] sm:$0xff]  ;;  %s68_s7 = int_to_ptr.vmem [resolvable:$true] %s67_s7 }
  0x28   :  { %v45_v1 = vshrl.u32 %v44_v0, 7  ;;  %s129_s1 = scalar_lea.vmem %s68_s7, 512  ;;  %p134_p3 = scmp.lt.s32.totalorder %s68_s7, %s68_s7 }
  0x29   :  { %p130_p2 = scmp.ne.s32.totalorder %s68_s7, %s129_s1  ;;  %p135_p4 = scmp.lt.s32.totalorder %s129_s1, %s129_s1 }
  0x2a   :  { %v46_v2 = vsub.s32 0, %v45_v1  ;;  %v50_v3 = vsub.s32 1, %v45_v1 }
  0x2b   :  { %p136_p5 = por %p135_p4, %p134_p3 }
  0x2c   :  { %v47_v7 = vrot.slane %v42_v5, %v46_v2  ;;  %v51_v8 = vrot.slane %v42_v5, %v50_v3 }
  0x2d   :  { %p137_p6 = pnand %p136_p5, %p130_p2 }
  0x2e   :  { %v54_v11 = vmul.f32 %v47_v7, %v38_v4  ;;  %v55_v12 = vmul.f32 %v51_v8, %v39_v6  ;;  %v56_v13 = vmul.f32 %v47_v7, %v40_v9  ;;  %v57_v14 = vmul.f32 %v51_v8, %v41_v10 }
  0x30   :  { %58 = vst [vmem:[#allocation7] sm:$0xff] %v54_v11  ;;  %59 = vst [vmem:[#allocation7 + $0x8] sm:$0xff] %v55_v12 }
  0x31   :  { %60 = vst [vmem:[#allocation7 + $0x10] sm:$0xff] %v56_v13  ;;  %61 = vst [vmem:[#allocation7 + $0x18] sm:$0xff] %v57_v14 }
  0x32   :  { %140 = shalt.err (!%p137_p6)
}
  0x33   :  { %s141_s10 = scalar_lea.hbm %s228_s2, 512 }
  0x34   :  { %p142_p7 = scmp.ne.s32.totalorder %s228_s2, %s141_s10  ;;  %p145_p8 = scmp.lt.u32.totalorder %s141_s10, %s228_s2 }
  0x36   :  { %p147_p9 = pnand %p145_p8, %p142_p7 }
  0x38   :  { %150 = shalt.err (!%p147_p9)
}
  0x39   :  { %73 = dma.vmem_to_hbm [thread:$0]  %s68_s7, 512, %s228_s2, [#allocation4], %s159_s0, %s159_s0, %s160_s3  }
  0x3a   :  { %155 = dma.done.wait [#allocation4], 512  }
  0x3b   :  { %156 = vsyncadd [#allocation4], 4294966784 }
  0x3c   :  { %77 = vsyncpa [#allocation3], 1 }
  0x3d   :  { %78 = vsyncpa [#allocation6], 1 }
  0x3e   :  { %79 = vsyncpa [#allocation4], 1 }

</bundles_post_ra>
